<compile_context>
chip_gen: v6e
topology: v6e:2x2x1
jax: 0.10.0
libtpu: 0.0.40
codegen_flags: <defaults>
</compile_context>

<pallas_src>
import jax
import jax.numpy as jnp
from jax import lax
from jax.experimental import pallas as pl
from jax.experimental.pallas import tpu as pltpu


def quadratic_critic_kernel(obs_i_ref, obs_j_ref, p_ref, out_ref, t_ref):
    # Cache t_i = obs_i @ P once per output-row tile.  The j grid axis is
    # "arbitrary" (sequential per core), so j == 0 is always seen first for
    # each i on the core that owns it.
    @pl.when(pl.program_id(1) == 0)
    def _():
        t_ref[...] = jnp.dot(
            obs_i_ref[...], p_ref[...], preferred_element_type=jnp.float32
        )

    # v = t_i @ obs_j^T expressed as a transposed-RHS contraction (no obs.T
    # materialization, no XLU vxpose — the MXU takes the transposed operand).
    v = lax.dot_general(
        t_ref[...],
        obs_j_ref[...],
        dimension_numbers=(((1,), (1,)), ((), ())),
        preferred_element_type=jnp.float32,
    )
    out_ref[...] = v.astype(out_ref.dtype)


def _pick_tile(n: int) -> int:
    """Largest 128-multiple tile that evenly divides n, else the full extent."""
    for t in (512, 256, 128):
        if n % t == 0:
            return t
    return n  # tiny / non-128-aligned batch: single full-extent block


def quadratic_critic(obs: jax.Array, P: jax.Array, *, tm: int | None = None,
                     tn: int | None = None) -> jax.Array:
    """V(obs) = obs @ P @ obs.T, computed in a tiled Pallas TPU kernel."""
    B, D = obs.shape
    assert P.shape == (D, D)
    obs = obs.astype(jnp.float32)
    P = P.astype(jnp.float32)

    tm = _pick_tile(B) if tm is None else tm
    tn = _pick_tile(B) if tn is None else tn
    assert B % tm == 0 and B % tn == 0

    grid = (B // tm, B // tn)

    return pl.pallas_call(
        quadratic_critic_kernel,
        out_shape=jax.ShapeDtypeStruct((B, B), jnp.float32),
        grid_spec=pltpu.PrefetchScalarGridSpec(
            num_scalar_prefetch=0,
            grid=grid,
            in_specs=[
                pl.BlockSpec((tm, D), lambda i, j: (i, 0)),  # obs rows (lhs), re-DMA'd only when i changes
                pl.BlockSpec((tn, D), lambda i, j: (j, 0)),  # obs rows (rhs)
                pl.BlockSpec((D, D), lambda i, j: (0, 0)),   # P, resident across the whole grid
            ],
            out_specs=pl.BlockSpec((tm, tn), lambda i, j: (i, j)),
            scratch_shapes=[pltpu.VMEM((tm, D), jnp.float32)],  # cached t_i = obs_i @ P
        ),
        compiler_params=pltpu.CompilerParams(
            # i parallel -> megacore sharding on v7x (no-op on v5e/v6e);
            # j arbitrary -> sequential inner axis so the t_i cache is valid.
            dimension_semantics=("parallel", "arbitrary"),
        ),
    )(obs, obs, P)


if __name__ == "__main__":
    key = jax.random.PRNGKey(0)
    k_obs, k_p, k_obs2, k_p2 = jax.random.split(key, 4)

    # --- Small-shape test (matches the module's typical tiny obs batch). ---
    batch, obs_dim = 8, 32
    obs = jax.random.normal(k_obs, (batch, obs_dim), dtype=jnp.float32)
    P = jnp.eye(obs_dim, dtype=jnp.float32) + 0.01 * jax.random.normal(
        k_p, (obs_dim, obs_dim), dtype=jnp.float32
    )
    out = jax.block_until_ready(quadratic_critic(obs, P))
    ref = obs @ P @ obs.T
    assert out.shape == (batch, batch)
    assert jnp.allclose(out, ref, atol=1e-3, rtol=1e-3), "mismatch vs reference (small)"

    # --- Tiled-path test: exercises the 2-D grid + cached t_i scratch. ---
    batch2, obs_dim2 = 256, 128
    obs2 = jax.random.normal(k_obs2, (batch2, obs_dim2), dtype=jnp.float32)
    P2 = jnp.eye(obs_dim2, dtype=jnp.float32) + 0.01 * jax.random.normal(
        k_p2, (obs_dim2, obs_dim2), dtype=jnp.float32
    )
    out2 = jax.block_until_ready(quadratic_critic(obs2, P2, tm=128, tn=128))
    ref2 = obs2 @ P2 @ obs2.T
    assert out2.shape == (batch2, batch2)
    assert jnp.allclose(out2, ref2, atol=1e-2, rtol=1e-3), "mismatch vs reference (tiled)"

    print("KERNEL_OK")
</pallas_src>

<mosaic_0001>
module attributes {stable_mosaic.version = 11 : i64} {
  func.func @quadratic_critic_kernel(%arg0: i32, %arg1: i32, %arg2: memref<8x32xf32, #tpu.memory_space<vmem>>, %arg3: memref<8x32xf32, #tpu.memory_space<vmem>>, %arg4: memref<32x32xf32, #tpu.memory_space<vmem>>, %arg5: memref<8x8xf32, #tpu.memory_space<vmem>>, %arg6: memref<8x32xf32, #tpu.memory_space<vmem>>) attributes {dimension_semantics = [#tpu.dimension_semantics<parallel>, #tpu.dimension_semantics<arbitrary>], iteration_bounds = array<i64: 1, 1>, scalar_prefetch = 0 : i64, scratch_operands = 1 : i64, tpu.core_type = #tpu.core_type<tc>, window_params = [{transform_indices = @transform_0, window_bounds = array<i64: 8, 32>}, {transform_indices = @transform_1, window_bounds = array<i64: 8, 32>}, {pipeline_mode = #tpu.pipeline_mode<synchronous>, transform_indices = @transform_2, window_bounds = array<i64: 32, 32>}, {transform_indices = @transform_3, window_bounds = array<i64: 8, 8>}]} {
    %c0_i32 = arith.constant 0 : i32
    %0 = arith.cmpi eq, %arg1, %c0_i32 : i32
    %1 = arith.extui %0 : i1 to i32
    %c0_i32_0 = arith.constant 0 : i32
    %2 = arith.cmpi ne, %1, %c0_i32_0 : i32
    scf.if %2 {
      %c0_6 = arith.constant 0 : index
      %c0_7 = arith.constant 0 : index
      %7 = vector.load %arg2[%c0_6, %c0_7] : memref<8x32xf32, #tpu.memory_space<vmem>>, vector<8x32xf32>
      %c0_8 = arith.constant 0 : index
      %c0_9 = arith.constant 0 : index
      %8 = vector.load %arg4[%c0_8, %c0_9] : memref<32x32xf32, #tpu.memory_space<vmem>>, vector<32x32xf32>
      %cst_10 = arith.constant dense<0.000000e+00> : vector<8x32xf32>
      %9 = tpu.matmul %7, %8, %cst_10 {dimension_numbers = #tpu.dot_dimension_numbers<[1], [0], [0], [1], [0, 0, 1, 1], [], []>} : vector<8x32xf32>, vector<32x32xf32>, vector<8x32xf32> -> vector<8x32xf32>
      %c0_11 = arith.constant 0 : index
      %c0_12 = arith.constant 0 : index
      %10 = vector.load %arg6[%c0_11, %c0_12] : memref<8x32xf32, #tpu.memory_space<vmem>>, vector<8x32xf32>
      tpu.vector_store %arg6[%c0_11, %c0_12], %9 {strides = array<i32>} : memref<8x32xf32, #tpu.memory_space<vmem>>, vector<8x32xf32>,
    } else {
    }
    %c0 = arith.constant 0 : index
    %c0_1 = arith.constant 0 : index
    %3 = vector.load %arg6[%c0, %c0_1] : memref<8x32xf32, #tpu.memory_space<vmem>>, vector<8x32xf32>
    %c0_2 = arith.constant 0 : index
    %c0_3 = arith.constant 0 : index
    %4 = vector.load %arg3[%c0_2, %c0_3] : memref<8x32xf32, #tpu.memory_space<vmem>>, vector<8x32xf32>
    %cst = arith.constant dense<0.000000e+00> : vector<8x8xf32>
    %5 = tpu.matmul %3, %4, %cst {dimension_numbers = #tpu.dot_dimension_numbers<[1], [1], [0], [0], [0, 0, 1, 0], [], []>} : vector<8x32xf32>, vector<8x32xf32>, vector<8x8xf32> -> vector<8x8xf32>
    %c0_4 = arith.constant 0 : index
    %c0_5 = arith.constant 0 : index
    %6 = vector.load %arg5[%c0_4, %c0_5] : memref<8x8xf32, #tpu.memory_space<vmem>>, vector<8x8xf32>
    tpu.vector_store %arg5[%c0_4, %c0_5], %5 {strides = array<i32>} : memref<8x8xf32, #tpu.memory_space<vmem>>, vector<8x8xf32>,
    return
  }
  func.func @transform_0(%arg0: i32, %arg1: i32) -> (i32, i32) {
    %c0_i32 = arith.constant 0 : i32
    %c0_i32_0 = arith.constant 0 : i32
    return %arg0, %c0_i32 : i32, i32
  }
  func.func @transform_1(%arg0: i32, %arg1: i32) -> (i32, i32) {
    %c0_i32 = arith.constant 0 : i32
    %c0_i32_0 = arith.constant 0 : i32
    return %arg1, %c0_i32 : i32, i32
  }
  func.func @transform_2(%arg0: i32, %arg1: i32) -> (i32, i32) {
    %c0_i32 = arith.constant 0 : i32
    %c0_i32_0 = arith.constant 0 : i32
    %c0_i32_1 = arith.constant 0 : i32
    return %c0_i32, %c0_i32_0 : i32, i32
  }
  func.func @transform_3(%arg0: i32, %arg1: i32) -> (i32, i32) {
    %c0_i32 = arith.constant 0 : i32
    return %arg0, %arg1 : i32, i32
  }
}

</mosaic_0001>

<bundles_post_ra>
// kernel: tpu_custom_call.1
= control target key start
LH: loop header
LB: loop body
LE: loop exit
PB: predicated region body
PF: predicated region fallthrough
CT: control target
= control target key end

     0   :  { %8 = vsyncpa [#allocation4], 0  ;;  %s393_s0 = inlined_call_operand.hbm [shape: f32[8,32], index: 0, kind: input, shape index: {}]   ;;  %s394_s1 = inlined_call_operand.hbm [shape: f32[8,32], index: 1, kind: input, shape index: {}]   ;;  %s395_s2 = inlined_call_operand.hbm [shape: f32[32,32], index: 2, kind: input, shape index: {}]   ;;  %s396_s3 = inlined_call_operand.hbm [shape: f32[8,8], index: 3, kind: output, shape index: {}]  }
   0x1   :  { %9 = vsyncpa [#allocation7], 0 }
   0x2   :  { %10 = vsyncpa [#allocation5], 0  ;;  %s353_s12 = smov [#allocation6]   ;;  %s354_s14 = smov [#allocation3]  }
   0x3   :  { %s27_s13 = sshll.u32 %s353_s12, 4  ;;  %s17_s15 = sshll.u32 %s354_s14, 4  ;;  %s28_s13 = int_to_ptr.vmem [resolvable:$true] %s27_s13  ;;  %s18_s15 = int_to_ptr.vmem [resolvable:$true] %s17_s15 }
   0x4   :  { %s275_s16 = scalar_lea.vmem %s28_s13, 128  ;;  %p280_p1 = scmp.lt.s32.totalorder %s28_s13, %s28_s13 }
   0x5   :  { %p276_p0 = scmp.ne.s32.totalorder %s28_s13, %s275_s16  ;;  %p281_p2 = scmp.lt.s32.totalorder %s275_s16, %s275_s16 }
   0x7   :  { %p282_p3 = por %p281_p2, %p280_p1 }
   0x9   :  { %p283_p4 = pnand %p282_p3, %p276_p0 }
   0xb   :  { %286 = shalt.err (!%p283_p4)
}
   0xc   :  { %30 = dma.hbm_to_vmem [thread:$0]  %s394_s1, 128, %s28_s13, [#allocation7]  }
   0xd   :  { %s295_s19 = scalar_lea.vmem %s18_s15, 128  ;;  %p300_p6 = scmp.lt.s32.totalorder %s18_s15, %s18_s15 }
   0xe   :  { %p296_p5 = scmp.ne.s32.totalorder %s18_s15, %s295_s19  ;;  %p301_p7 = scmp.lt.s32.totalorder %s295_s19, %s295_s19 }
  0x10   :  { %p302_p8 = por %p301_p7, %p300_p6 }
  0x12   :  { %p303_p9 = pnand %p302_p8, %p296_p5 }
  0x14   :  { %306 = shalt.err (!%p303_p9)
}
  0x15   :  { %20 = dma.hbm_to_vmem [thread:$0]  %s393_s0, 128, %s18_s15, [#allocation4]  }
  0x16   :  { %s355_s22 = smov [#allocation8]  }
  0x17   :  { %s36_s23 = sshll.u32 %s355_s22, 4  ;;  %s37_s23 = int_to_ptr.vmem [resolvable:$true] %s36_s23 }
  0x18   :  { %s315_s24 = scalar_lea.vmem %s37_s23, 512  ;;  %p320_p11 = scmp.lt.s32.totalorder %s37_s23, %s37_s23 }
  0x19   :  { %p316_p10 = scmp.ne.s32.totalorder %s37_s23, %s315_s24  ;;  %p321_p12 = scmp.lt.s32.totalorder %s315_s24, %s315_s24 }
  0x1b   :  { %p322_p13 = por %p321_p12, %p320_p11 }
  0x1d   :  { %p323_p0 = pnand %p322_p13, %p316_p10 }
  0x1f   :  { %326 = shalt.err (!%p323_p0)
}
  0x20   :  { %s356_s1 = smov 128   ;;  %s357_s25 = smov 8  }
  0x21   :  { %42 = dma.hbm_to_vmem [thread:$0]  %s395_s2, 512, %s37_s23, [#allocation7], %s356_s1, %s356_s1, %s357_s25  }
  0x22   :  { %347 = dma.done.wait [#allocation4], 128  }
  0x23   :  { %348 = vsyncadd [#allocation4], 4294967168 }
  0x24   :  { %349 = dma.done.wait [#allocation7], 640  }
  0x25   :  { %350 = vsyncadd [#allocation7], 4294966656  ;;  %v358_v0 = vmov 0.0   ;;  %vm359_vm0 = vmmov 0   ;;  %v60_v1 = vld [vmem:[#allocation8 + $0x18] sm:$0xff]  ;;  %v59_v2 = vld [vmem:[#allocation8 + $0x10] sm:$0xff] }
  0x26   :  { %243 = vmatprep.subr.mxu0 %v358_v0  ;;  %251 = vmatprep.mubr.msk.f32.mxu0 %vm359_vm0, %v358_v0  ;;  %v58_v3 = vld [vmem:[#allocation8 + $0x8] sm:$0xff]  ;;  %v57_v4 = vld [vmem:[#allocation8] sm:$0xff]  ;;  %v56_v5 = vld [vmem:[#allocation3] sm:$0xff]  ;;  %vm61_vm1 = vcmask 261120   ;;  %s360_s0 = smov [#allocation9]   ;;  %vm215_vm2 = vcmask 64512  }
  0x27   :  { %254 = vmatprep.subr.mxu1 %v358_v0  ;;  %256 = vmatprep.mubr.msk.f32.mxu1 %vm359_vm0, %v358_v0  ;;  %v137_v6 = vld [vmem:[#allocation6] sm:$0xff]  ;;  %s223_s2 = sshll.u32 %s360_s0, 4  ;;  %s224_s2 = int_to_ptr.vmem [resolvable:$true] %s223_s2 }
  0x28   :  { %244 = vmatpush3.msra.mxu0 %v60_v1  ;;  %255 = vmatpush3.xpose.msk.msra.mxu1 %vm61_vm1, %v137_v6  ;;  %s327_s28 = scalar_lea.vmem %s224_s2, 128  ;;  %p332_p2 = scmp.lt.s32.totalorder %s224_s2, %s224_s2 }
  0x29   :  { %245 = vmatprep.subr.mxu0 %v358_v0  ;;  %p328_p1 = scmp.ne.s32.totalorder %s224_s2, %s327_s28  ;;  %p333_p3 = scmp.lt.s32.totalorder %s327_s28, %s327_s28 }
  0x2a   :  { %246 = vmatpush3.msra.mxu0 %v59_v2 }
  0x2b   :  { %247 = vmatprep.subr.mxu0 %v358_v0  ;;  %p334_p4 = por %p333_p3, %p332_p2 }
  0x2c   :  { %248 = vmatpush3.msra.mxu0 %v58_v3 }
  0x2d   :  { %249 = vmatprep.subr.mxu0 %v358_v0  ;;  %p335_p5 = pnand %p334_p4, %p328_p1 }
  0x2e   :  { %250 = vmatpush3.msra.mxu0 %v57_v4 }
  0x2f   :  { %252 = vmatmul.mubr.msk.f32.vlgmr.msra.gmra.mxu0 %vm61_vm1, %v56_v5 }
  0xef   :  { %v131_v7 = vpop.f32.mrf.mxu0 }
  0xf0   :  { %135 = vst.msk [vmem:[#allocation2] sm:$0xff] %vm61_vm1, %v131_v7 }
  0xf1   :  { %v253_v8 = vpop.f32.mrf.mxu0 }
  0xf7   :  { %v136_v9 = vld [vmem:[#allocation2] sm:$0xff] }
  0xf8   :  { %257 = vmatmul.mubr.msk.f32.vlgmr.msra.gmra.mxu1 %vm61_vm1, %v136_v9 }
 0x1b8   :  { %v211_v10 = vpop.f32.mrf.mxu1 }
 0x1b9   :  { %216 = vst.msk [vmem:[#allocation9] sm:$0xff] %vm215_vm2, %v211_v10 }
 0x1ba   :  { %v258_v11 = vpop.f32.mrf.mxu1 }
 0x1bb   :  { %338 = shalt.err (!%p335_p5)
}
 0x1bc   :  { %226 = dma.vmem_to_hbm [thread:$0]  %s224_s2, 128, %s396_s3, [#allocation5]  }
 0x1bd   :  { %351 = dma.done.wait [#allocation5], 128  }
 0x1be   :  { %352 = vsyncadd [#allocation5], 4294967168 }
 0x1bf   :  { %230 = vsyncpa [#allocation4], 1 }
 0x1c0   :  { %231 = vsyncpa [#allocation7], 1 }
 0x1c1   :  { %232 = vsyncpa [#allocation5], 1 }

</bundles_post_ra>
